<compile_context>
chip_gen: v7x
topology: tpu7x:2x2x1
jax: 0.10.0
libtpu: 0.0.40
codegen_flags: <defaults>
</compile_context>

<pallas_src>
import math

import jax
import jax.numpy as jnp
from jax.experimental import pallas as pl
from jax.experimental.pallas import tpu as pltpu


_SQRT_HALF = 0.7071067811865476


def _erf_approx(z):
    """Abramowitz & Stegun 7.1.26 polynomial erf, |abs error| <= 1.5e-7."""
    a1 = 0.254829592
    a2 = -0.284496736
    a3 = 1.421413741
    a4 = -1.453152027
    a5 = 1.061405429
    p = 0.3275911
    az = jnp.abs(z)
    t = 1.0 / (1.0 + p * az)
    poly = ((((a5 * t + a4) * t + a3) * t + a2) * t + a1) * t
    y = 1.0 - poly * jnp.exp(-az * az)
    return jnp.where(z >= 0, y, -y)


def _gelu_exact(x):
    # torch.nn.GELU() default: x * 0.5 * (1 + erf(x / sqrt(2)))
    return 0.5 * x * (1.0 + _erf_approx(x * _SQRT_HALF))


def _ffn_kernel(x_ref, w1_ref, b1_ref, w2_ref, b2_ref, o_ref, acc_ref):
    # x_ref:  (tm, d_model)     w1_ref: (d_model, tk)    b1_ref: (1, tk)
    # w2_ref: (tk, d_model)     b2_ref: (1, d_model)
    # o_ref:  (tm, d_model)     acc_ref: (tm, d_model) f32 scratch
    k = pl.program_id(1)

    @pl.when(k == 0)
    def _():
        acc_ref[...] = jnp.zeros_like(acc_ref)

    # linear1 (this d_ff tile) + bias + exact GELU, all in f32 on the MXU/VPU.
    h = jnp.dot(x_ref[...], w1_ref[...], preferred_element_type=jnp.float32)
    h = h + b1_ref[...].astype(jnp.float32)
    h = _gelu_exact(h)

    # linear2: accumulate this d_ff tile's contribution (f32 accumulator).
    acc_ref[...] += jnp.dot(h.astype(w2_ref.dtype), w2_ref[...],
                            preferred_element_type=jnp.float32)

    @pl.when(k == pl.num_programs(1) - 1)
    def _():
        out = acc_ref[...] + b2_ref[...].astype(jnp.float32)
        o_ref[...] = out.astype(o_ref.dtype)


def _round_up(x, m):
    return ((x + m - 1) // m) * m


def _pick_k_tile(d_ff, tk):
    """Largest d_ff tile <= tk that divides d_ff (multiple of 128), else d_ff."""
    if d_ff <= tk:
        return d_ff
    best = None
    for cand in range(128, tk + 1, 128):
        if d_ff % cand == 0:
            best = cand
    return best if best is not None else d_ff


def position_wise_ffn(x, w1, b1, w2, b2, *, tm=256, tk=512):
    """x: [..., d_model]; w1: [d_model, d_ff]; b1: [d_ff]; w2: [d_ff, d_model]; b2: [d_model].

    Weights are stored [in, out], i.e. the transpose of torch.nn.Linear.weight,
    so the forward pass is x @ w + b (same math as the PyTorch module).
    Pass bf16 x/w1/w2 for the full-rate MXU path on v6e/v7x; accumulation and
    bias+GELU stay in f32 either way.
    """
    *lead, d_model = x.shape
    d_ff = w1.shape[1]
    assert w1.shape == (d_model, d_ff)
    assert w2.shape == (d_ff, d_model)

    M = math.prod(lead) if lead else 1
    xf = x.reshape(M, d_model)
    if xf.dtype != w1.dtype:
        xf = xf.astype(w1.dtype)

    tm_eff = min(tm, _round_up(M, 8))
    tk_eff = _pick_k_tile(d_ff, tk)
    grid_m = pl.cdiv(M, tm_eff)     # last block may be partial (write is masked)
    grid_k = d_ff // tk_eff         # tk_eff always divides d_ff exactly

    # Working-set estimate (double-buffered blocks + accumulator + hidden temps)
    # with 2x headroom; replaces the 16/32 MiB scoped-VMEM defaults.
    isz = jnp.dtype(xf.dtype).itemsize
    wsz = jnp.dtype(w1.dtype).itemsize
    est = (2 * tm_eff * d_model * isz * 2               # x + out blocks (double-buffered)
           + 2 * d_model * tk_eff * wsz                 # W1 tile (double-buffered)
           + 2 * tk_eff * d_model * wsz                 # W2 tile (double-buffered)
           + 2 * 8 * tk_eff * jnp.dtype(b1.dtype).itemsize
           + 2 * 8 * d_model * jnp.dtype(b2.dtype).itemsize
           + tm_eff * d_model * 4                       # f32 accumulator scratch
           + 2 * tm_eff * tk_eff * 4)                   # hidden-activation temporaries
    vmem_limit = int(min(max(2 * est + (4 << 20), 16 << 20), 96 << 20))

    out = pl.pallas_call(
        _ffn_kernel,
        out_shape=jax.ShapeDtypeStruct((M, d_model), xf.dtype),
        grid_spec=pltpu.PrefetchScalarGridSpec(
            num_scalar_prefetch=0,
            grid=(grid_m, grid_k),
            in_specs=[
                pl.BlockSpec((tm_eff, d_model), lambda i, k: (i, 0)),   # x rows
                pl.BlockSpec((d_model, tk_eff), lambda i, k: (0, k)),   # W1 tile
                pl.BlockSpec((1, tk_eff), lambda i, k: (0, k)),         # b1 tile
                pl.BlockSpec((tk_eff, d_model), lambda i, k: (k, 0)),   # W2 tile
                pl.BlockSpec((1, d_model), lambda i, k: (0, 0)),        # b2
            ],
            out_specs=pl.BlockSpec((tm_eff, d_model), lambda i, k: (i, 0)),
            scratch_shapes=[pltpu.VMEM((tm_eff, d_model), jnp.float32)],
        ),
        compiler_params=pltpu.CompilerParams(
            dimension_semantics=("parallel", "arbitrary"),
            vmem_limit_bytes=vmem_limit,
        ),
    )(xf, w1, b1.reshape(1, d_ff), w2, b2.reshape(1, d_model))

    return out.reshape(*lead, d_model)


def _reference_f32(x, w1, b1, w2, b2):
    hp = jax.lax.Precision.HIGHEST
    h = jnp.dot(x, w1, precision=hp) + b1
    h = jax.nn.gelu(h, approximate=False)          # exact erf GELU, like nn.GELU()
    return jnp.dot(h, w2, precision=hp) + b2


if __name__ == "__main__":
    key = jax.random.PRNGKey(0)
    B, S, d_model, d_ff = 2, 8, 128, 256

    k1, k2, k3, k4, k5 = jax.random.split(key, 5)
    x = jax.random.normal(k1, (B, S, d_model), dtype=jnp.float32)
    # nn.init.normal_(std=0.02) for both weight matrices (stored [in, out]).
    w1 = 0.02 * jax.random.normal(k2, (d_model, d_ff), dtype=jnp.float32)
    b1 = 0.01 * jax.random.normal(k3, (d_ff,), dtype=jnp.float32)
    w2 = 0.02 * jax.random.normal(k4, (d_ff, d_model), dtype=jnp.float32)
    b2 = 0.01 * jax.random.normal(k5, (d_model,), dtype=jnp.float32)

    # f32 path: tight check against an f32 HIGHEST-precision reference.
    out = position_wise_ffn(x, w1, b1, w2, b2)
    jax.block_until_ready(out)
    ref = _reference_f32(x, w1, b1, w2, b2)
    assert out.shape == ref.shape, "shape mismatch"
    assert jnp.allclose(out, ref, atol=2e-5, rtol=1e-5), "FFN f32 output mismatch"

    # Partial last row block + multi-tile d_ff reduction path (small tiles on purpose).
    x_r = jax.random.normal(jax.random.PRNGKey(1), (3, 5, d_model), dtype=jnp.float32)
    out_r = position_wise_ffn(x_r, w1, b1, w2, b2, tm=8, tk=128)
    jax.block_until_ready(out_r)
    ref_r = _reference_f32(x_r, w1, b1, w2, b2)
    assert jnp.allclose(out_r, ref_r, atol=2e-5, rtol=1e-5), "FFN tiled/ragged mismatch"

    # bf16 weights/activations (the v6e/v7x fast path), compared against a
    # reference that applies the same bf16 casts; accumulation stays f32.
    xb, w1b, w2b = (a.astype(jnp.bfloat16) for a in (x, w1, w2))
    out_b = position_wise_ffn(xb, w1b, b1, w2b, b2)
    jax.block_until_ready(out_b)
    hp = jax.lax.Precision.HIGHEST
    hb = jnp.dot(xb.astype(jnp.float32), w1b.astype(jnp.float32), precision=hp) + b1
    hb = jax.nn.gelu(hb, approximate=False).astype(jnp.bfloat16)
    ref_b = (jnp.dot(hb.astype(jnp.float32), w2b.astype(jnp.float32), precision=hp)
             + b2).astype(jnp.bfloat16)
    assert out_b.shape == ref_b.shape, "bf16 shape mismatch"
    assert jnp.allclose(out_b.astype(jnp.float32), ref_b.astype(jnp.float32),
                        atol=2e-2, rtol=2e-2), "FFN bf16 output mismatch"

    print("KERNEL_OK")
</pallas_src>

<mosaic_0001>
module attributes {stable_mosaic.version = 11 : i64} {
  func.func @_ffn_kernel(%arg0: i32, %arg1: i32, %arg2: memref<16x128xf32, #tpu.memory_space<vmem>>, %arg3: memref<128x256xf32, #tpu.memory_space<vmem>>, %arg4: memref<1x256xf32, #tpu.memory_space<vmem>>, %arg5: memref<256x128xf32, #tpu.memory_space<vmem>>, %arg6: memref<1x128xf32, #tpu.memory_space<vmem>>, %arg7: memref<16x128xf32, #tpu.memory_space<vmem>>, %arg8: memref<16x128xf32, #tpu.memory_space<vmem>>) attributes {dimension_semantics = [#tpu.dimension_semantics<parallel>, #tpu.dimension_semantics<arbitrary>], iteration_bounds = array<i64: 1, 1>, scalar_prefetch = 0 : i64, scratch_operands = 1 : i64, tpu.core_type = #tpu.core_type<tc>, window_params = [{transform_indices = @transform_0, window_bounds = array<i64: 16, 128>}, {transform_indices = @transform_1, window_bounds = array<i64: 128, 256>}, {transform_indices = @transform_2, window_bounds = array<i64: 1, 256>}, {transform_indices = @transform_3, window_bounds = array<i64: 256, 128>}, {pipeline_mode = #tpu.pipeline_mode<synchronous>, transform_indices = @transform_4, window_bounds = array<i64: 1, 128>}, {transform_indices = @transform_5, window_bounds = array<i64: 16, 128>}]} {
    %c0_i32 = arith.constant 0 : i32
    %0 = arith.cmpi eq, %arg1, %c0_i32 : i32
    %1 = arith.extui %0 : i1 to i32
    %c0_i32_0 = arith.constant 0 : i32
    %2 = arith.cmpi ne, %1, %c0_i32_0 : i32
    scf.if %2 {
      %cst_30 = arith.constant 0.000000e+00 : f32
      %57 = vector.broadcast %cst_30 : f32 to vector<16x128xf32>
      %c0_31 = arith.constant 0 : index
      %c0_32 = arith.constant 0 : index
      %58 = vector.load %arg8[%c0_31, %c0_32] : memref<16x128xf32, #tpu.memory_space<vmem>>, vector<16x128xf32>
      tpu.vector_store %arg8[%c0_31, %c0_32], %57 {strides = array<i32>} : memref<16x128xf32, #tpu.memory_space<vmem>>, vector<16x128xf32>,
    } else {
    }
    %c0 = arith.constant 0 : index
    %c0_1 = arith.constant 0 : index
    %3 = vector.load %arg2[%c0, %c0_1] : memref<16x128xf32, #tpu.memory_space<vmem>>, vector<16x128xf32>
    %c0_2 = arith.constant 0 : index
    %c0_3 = arith.constant 0 : index
    %4 = vector.load %arg3[%c0_2, %c0_3] : memref<128x256xf32, #tpu.memory_space<vmem>>, vector<128x256xf32>
    %cst = arith.constant dense<0.000000e+00> : vector<16x256xf32>
    %5 = tpu.matmul %3, %4, %cst {dimension_numbers = #tpu.dot_dimension_numbers<[1], [0], [0], [1], [0, 0, 1, 1], [], []>} : vector<16x128xf32>, vector<128x256xf32>, vector<16x256xf32> -> vector<16x256xf32>
    %c0_4 = arith.constant 0 : index
    %c0_5 = arith.constant 0 : index
    %6 = vector.load %arg4[%c0_4, %c0_5] : memref<1x256xf32, #tpu.memory_space<vmem>>, vector<1x256xf32>
    %7 = vector.broadcast %6 : vector<1x256xf32> to vector<16x256xf32>
    %8 = arith.addf %5, %7 : vector<16x256xf32>
    %cst_6 = arith.constant 5.000000e-01 : f32
    %9 = vector.broadcast %cst_6 : f32 to vector<16x256xf32>
    %10 = arith.mulf %9, %8 : vector<16x256xf32>
    %cst_7 = arith.constant 0.707106769 : f32
    %11 = vector.broadcast %cst_7 : f32 to vector<16x256xf32>
    %12 = arith.mulf %8, %11 : vector<16x256xf32>
    %13 = math.absf %12 : vector<16x256xf32>
    %cst_8 = arith.constant 0.327591091 : f32
    %14 = vector.broadcast %cst_8 : f32 to vector<16x256xf32>
    %15 = arith.mulf %14, %13 : vector<16x256xf32>
    %cst_9 = arith.constant 1.000000e+00 : f32
    %16 = vector.broadcast %cst_9 : f32 to vector<16x256xf32>
    %17 = arith.addf %16, %15 : vector<16x256xf32>
    %cst_10 = arith.constant 1.000000e+00 : f32
    %18 = vector.broadcast %cst_10 : f32 to vector<16x256xf32>
    %19 = arith.divf %18, %17 : vector<16x256xf32>
    %cst_11 = arith.constant 1.06140542 : f32
    %20 = vector.broadcast %cst_11 : f32 to vector<16x256xf32>
    %21 = arith.mulf %20, %19 : vector<16x256xf32>
    %cst_12 = arith.constant -1.45315206 : f32
    %22 = vector.broadcast %cst_12 : f32 to vector<16x256xf32>
    %23 = arith.addf %21, %22 : vector<16x256xf32>
    %24 = arith.mulf %23, %19 : vector<16x256xf32>
    %cst_13 = arith.constant 1.42141378 : f32
    %25 = vector.broadcast %cst_13 : f32 to vector<16x256xf32>
    %26 = arith.addf %24, %25 : vector<16x256xf32>
    %27 = arith.mulf %26, %19 : vector<16x256xf32>
    %cst_14 = arith.constant -0.284496725 : f32
    %28 = vector.broadcast %cst_14 : f32 to vector<16x256xf32>
    %29 = arith.addf %27, %28 : vector<16x256xf32>
    %30 = arith.mulf %29, %19 : vector<16x256xf32>
    %cst_15 = arith.constant 0.254829586 : f32
    %31 = vector.broadcast %cst_15 : f32 to vector<16x256xf32>
    %32 = arith.addf %30, %31 : vector<16x256xf32>
    %33 = arith.mulf %32, %19 : vector<16x256xf32>
    %cst_16 = arith.constant 0.000000e+00 : f32
    %34 = vector.broadcast %cst_16 : f32 to vector<16x256xf32>
    %35 = arith.subf %34, %13 : vector<16x256xf32>
    %36 = arith.mulf %35, %13 : vector<16x256xf32>
    %37 = math.exp %36 : vector<16x256xf32>
    %38 = arith.mulf %33, %37 : vector<16x256xf32>
    %cst_17 = arith.constant 1.000000e+00 : f32
    %39 = vector.broadcast %cst_17 : f32 to vector<16x256xf32>
    %40 = arith.subf %39, %38 : vector<16x256xf32>
    %cst_18 = arith.constant 0.000000e+00 : f32
    %41 = vector.broadcast %cst_18 : f32 to vector<16x256xf32>
    %42 = arith.cmpf oge, %12, %41 : vector<16x256xf32>
    %cst_19 = arith.constant 0.000000e+00 : f32
    %43 = vector.broadcast %cst_19 : f32 to vector<16x256xf32>
    %44 = arith.subf %43, %40 : vector<16x256xf32>
    %45 = arith.select %42, %40, %44 : vector<16x256xi1>, vector<16x256xf32>
    %cst_20 = arith.constant 1.000000e+00 : f32
    %46 = vector.broadcast %cst_20 : f32 to vector<16x256xf32>
    %47 = arith.addf %46, %45 : vector<16x256xf32>
    %48 = arith.mulf %10, %47 : vector<16x256xf32>
    %c0_21 = arith.constant 0 : index
    %c0_22 = arith.constant 0 : index
    %49 = vector.load %arg8[%c0_21, %c0_22] : memref<16x128xf32, #tpu.memory_space<vmem>>, vector<16x128xf32>
    %c0_23 = arith.constant 0 : index
    %c0_24 = arith.constant 0 : index
    %50 = vector.load %arg5[%c0_23, %c0_24] : memref<256x128xf32, #tpu.memory_space<vmem>>, vector<256x128xf32>
    %cst_25 = arith.constant dense<0.000000e+00> : vector<16x128xf32>
    %51 = tpu.matmul %48, %50, %cst_25 {dimension_numbers = #tpu.dot_dimension_numbers<[1], [0], [0], [1], [0, 0, 1, 1], [], []>} : vector<16x256xf32>, vector<256x128xf32>, vector<16x128xf32> -> vector<16x128xf32>
    %52 = arith.addf %49, %51 : vector<16x128xf32>
    %c0_26 = arith.constant 0 : index
    %c0_27 = arith.constant 0 : index
    %53 = vector.load %arg8[%c0_26, %c0_27] : memref<16x128xf32, #tpu.memory_space<vmem>>, vector<16x128xf32>
    tpu.vector_store %arg8[%c0_26, %c0_27], %52 {strides = array<i32>} : memref<16x128xf32, #tpu.memory_space<vmem>>, vector<16x128xf32>,
    %c0_i32_28 = arith.constant 0 : i32
    %54 = arith.cmpi eq, %arg1, %c0_i32_28 : i32
    %55 = arith.extui %54 : i1 to i32
    %c0_i32_29 = arith.constant 0 : i32
    %56 = arith.cmpi ne, %55, %c0_i32_29 : i32
    scf.if %56 {
      %c0_30 = arith.constant 0 : index
      %c0_31 = arith.constant 0 : index
      %57 = vector.load %arg8[%c0_30, %c0_31] : memref<16x128xf32, #tpu.memory_space<vmem>>, vector<16x128xf32>
      %c0_32 = arith.constant 0 : index
      %c0_33 = arith.constant 0 : index
      %58 = vector.load %arg6[%c0_32, %c0_33] : memref<1x128xf32, #tpu.memory_space<vmem>>, vector<1x128xf32>
      %59 = vector.broadcast %58 : vector<1x128xf32> to vector<16x128xf32>
      %60 = arith.addf %57, %59 : vector<16x128xf32>
      %c0_34 = arith.constant 0 : index
      %c0_35 = arith.constant 0 : index
      %61 = vector.load %arg7[%c0_34, %c0_35] : memref<16x128xf32, #tpu.memory_space<vmem>>, vector<16x128xf32>
      tpu.vector_store %arg7[%c0_34, %c0_35], %60 {strides = array<i32>} : memref<16x128xf32, #tpu.memory_space<vmem>>, vector<16x128xf32>,
    } else {
    }
    return
  }
  func.func @transform_0(%arg0: i32, %arg1: i32) -> (i32, i32) {
    %c0_i32 = arith.constant 0 : i32
    %c0_i32_0 = arith.constant 0 : i32
    return %arg0, %c0_i32 : i32, i32
  }
  func.func @transform_1(%arg0: i32, %arg1: i32) -> (i32, i32) {
    %c0_i32 = arith.constant 0 : i32
    %c0_i32_0 = arith.constant 0 : i32
    return %c0_i32, %arg1 : i32, i32
  }
  func.func @transform_2(%arg0: i32, %arg1: i32) -> (i32, i32) {
    %c0_i32 = arith.constant 0 : i32
    %c0_i32_0 = arith.constant 0 : i32
    return %c0_i32, %arg1 : i32, i32
  }
  func.func @transform_3(%arg0: i32, %arg1: i32) -> (i32, i32) {
    %c0_i32 = arith.constant 0 : i32
    %c0_i32_0 = arith.constant 0 : i32
    return %arg1, %c0_i32 : i32, i32
  }
  func.func @transform_4(%arg0: i32, %arg1: i32) -> (i32, i32) {
    %c0_i32 = arith.constant 0 : i32
    %c0_i32_0 = arith.constant 0 : i32
    %c0_i32_1 = arith.constant 0 : i32
    return %c0_i32, %c0_i32_0 : i32, i32
  }
  func.func @transform_5(%arg0: i32, %arg1: i32) -> (i32, i32) {
    %c0_i32 = arith.constant 0 : i32
    %c0_i32_0 = arith.constant 0 : i32
    return %arg0, %c0_i32 : i32, i32
  }
}

</mosaic_0001>

<bundles_post_ra>
// kernel: tpu_custom_call.1
= control target key start
LH: loop header
LB: loop body
LE: loop exit
PB: predicated region body
PF: predicated region fallthrough
CT: control target
= control target key end

     0   :  { %10 = vsyncpa [#allocation4], 0  ;;  %s804_s0 = inlined_call_operand.hbm [shape: f32[16,128], index: 0, kind: input, shape index: {}]   ;;  %s805_s1 = inlined_call_operand.hbm [shape: f32[128,256], index: 1, kind: input, shape index: {}]   ;;  %s806_s2 = inlined_call_operand.vmem [shape: f32[1,256], index: 2, kind: input, shape index: {}]   ;;  %s807_s3 = inlined_call_operand.hbm [shape: f32[256,128], index: 3, kind: input, shape index: {}]   ;;  %s808_s4 = inlined_call_operand.vmem [shape: f32[1,128], index: 4, kind: input, shape index: {}]   ;;  %s809_s5 = inlined_call_operand.hbm [shape: f32[16,128], index: 5, kind: output, shape index: {}]  }
   0x1   :  { %11 = vsyncpa [#allocation7], 0 }
   0x2   :  { %12 = vsyncpa [#allocation5], 0  ;;  %s668_s18 = smov [#allocation6]   ;;  %s574_s22 = scalar_lea.hbm %s805_s1, 4096 }
   0x3   :  { %s30_s19 = sshll.u32 %s668_s18, 4  ;;  %p575_p0 = scmp.ne.s32.totalorder %s805_s1, %s574_s22  ;;  %s31_s19 = int_to_ptr.vmem [resolvable:$true] %s30_s19 }
   0x4   :  { %p578_p1 = scmp.lt.u32.totalorder %s574_s22, %s805_s1 }
   0x6   :  { %p580_p2 = pnand %p578_p1, %p575_p0 }
   0x8   :  { %583 = shalt.err (!%p580_p2)
}
   0x9   :  { %s584_s27 = scalar_lea.vmem %s31_s19, 4096  ;;  %p589_p4 = scmp.lt.s32.totalorder %s31_s19, %s31_s19 }
   0xa   :  { %p585_p3 = scmp.ne.s32.totalorder %s31_s19, %s584_s27  ;;  %p590_p5 = scmp.lt.s32.totalorder %s584_s27, %s584_s27 }
   0xc   :  { %p591_p6 = por %p590_p5, %p589_p4 }
   0xe   :  { %p592_p7 = pnand %p591_p6, %p585_p3 }
  0x10   :  { %595 = shalt.err (!%p592_p7)
}
  0x11   :  { %s669_s28 = smov 256   ;;  %s670_s29 = smov 16  }
  0x12   :  { %36 = dma.hbm_to_vmem [thread:$0]  %s805_s1, 4096, %s31_s19, [#allocation7], %s669_s28, %s669_s28, %s670_s29  }
  0x13   :  { %s671_s7 = smov [#allocation3]   ;;  %s596_s11 = scalar_lea.hbm %s804_s0, 256 }
  0x14   :  { %s18_s8 = sshll.u32 %s671_s7, 4  ;;  %p597_p8 = scmp.ne.s32.totalorder %s804_s0, %s596_s11  ;;  %s19_s8 = int_to_ptr.vmem [resolvable:$true] %s18_s8 }
  0x15   :  { %p600_p9 = scmp.lt.u32.totalorder %s596_s11, %s804_s0 }
  0x17   :  { %p602_p10 = pnand %p600_p9, %p597_p8 }
  0x19   :  { %605 = shalt.err (!%p602_p10)
}
  0x1a   :  { %s606_s16 = scalar_lea.vmem %s19_s8, 256  ;;  %p611_p12 = scmp.lt.s32.totalorder %s19_s8, %s19_s8 }
  0x1b   :  { %p607_p11 = scmp.ne.s32.totalorder %s19_s8, %s606_s16  ;;  %p612_p13 = scmp.lt.s32.totalorder %s606_s16, %s606_s16 }
  0x1d   :  { %p613_p0 = por %p612_p13, %p611_p12 }
  0x1f   :  { %p614_p1 = pnand %p613_p0, %p607_p11 }
  0x21   :  { %617 = shalt.err (!%p614_p1)
}
  0x22   :  { %s672_s1 = smov 128   ;;  %s673_s17 = smov 8  }
  0x23   :  { %24 = dma.hbm_to_vmem [thread:$0]  %s804_s0, 256, %s19_s8, [#allocation4], %s672_s1, %s672_s1, %s673_s17  }
  0x24   :  { %s674_s20 = smov [#allocation8]   ;;  %s618_s24 = scalar_lea.hbm %s807_s3, 4096 }
  0x25   :  { %s44_s21 = sshll.u32 %s674_s20, 4  ;;  %p619_p2 = scmp.ne.s32.totalorder %s807_s3, %s618_s24  ;;  %s45_s21 = int_to_ptr.vmem [resolvable:$true] %s44_s21 }
  0x26   :  { %p622_p3 = scmp.lt.u32.totalorder %s618_s24, %s807_s3 }
  0x28   :  { %p624_p4 = pnand %p622_p3, %p619_p2 }
  0x2a   :  { %627 = shalt.err (!%p624_p4)
}
  0x2b   :  { %s628_s29 = scalar_lea.vmem %s45_s21, 4096  ;;  %p633_p6 = scmp.lt.s32.totalorder %s45_s21, %s45_s21 }
  0x2c   :  { %p629_p5 = scmp.ne.s32.totalorder %s45_s21, %s628_s29  ;;  %p634_p7 = scmp.lt.s32.totalorder %s628_s29, %s628_s29 }
  0x2e   :  { %p635_p8 = por %p634_p7, %p633_p6 }
  0x30   :  { %p636_p9 = pnand %p635_p8, %p629_p5 }
  0x32   :  { %639 = shalt.err (!%p636_p9)
}
  0x33   :  { %50 = dma.hbm_to_vmem [thread:$0]  %s807_s3, 4096, %s45_s21, [#allocation7], %s672_s1, %s672_s1, %s673_s17  }
  0x34   :  { %662 = dma.done.wait [#allocation4], 256  }
  0x35   :  { %663 = vsyncadd [#allocation4], 4294967040 }
  0x36   :  { %664 = dma.done.wait [#allocation7], 8192  }
  0x37   :  { %665 = vsyncadd [#allocation7], 4294959104  ;;  %v675_v0 = vmov 0.0   ;;  %v71_v1 = vld [vmem:[#allocation6 + $0x8] sm:$0xff]  ;;  %v73_v2 = vld [vmem:[#allocation6 + $0x18] sm:$0xff]  ;;  %s676_s8 = smov [#allocation9]  }
  0x38   :  { %178 = vmatprep.mubr.f32.mxu0 %v675_v0  ;;  %v70_v3 = vld [vmem:[#allocation6] sm:$0xff]  ;;  %v485_v4 = vpack.c.bf16 %v73_v2, %v71_v1  ;;  %v72_v5 = vld [vmem:[#allocation6 + $0x10] sm:$0xff]  ;;  %v75_v6 = vld [vmem:[#allocation6 + $0x28] sm:$0xff]  ;;  %s433_s9 = sshll.u32 %s676_s8, 4  ;;  %s434_s9 = int_to_ptr.vmem [resolvable:$true] %s433_s9 }
  0x39   :  { %v77_v7 = vld [vmem:[#allocation6 + $0x38] sm:$0xff]  ;;  %v487_v8 = vpack.c.bf16 %v72_v5, %v70_v3  ;;  %v74_v10 = vld [vmem:[#allocation6 + $0x20] sm:$0xff]  ;;  %v76_v11 = vld [vmem:[#allocation6 + $0x30] sm:$0xff]  ;;  %s640_s10 = scalar_lea.vmem %s434_s9, 256  ;;  %p645_p11 = scmp.lt.s32.totalorder %s434_s9, %s434_s9 }
  0x3a   :  { %v489_v9 = vpack.c.bf16 %v77_v7, %v75_v6  ;;  %v79_v12 = vld [vmem:[#allocation6 + $0x48] sm:$0xff]  ;;  %486 = vmatprep.subr.bf16.mxu0 %v485_v4  ;;  %v81_v13 = vld [vmem:[#allocation6 + $0x58] sm:$0xff]  ;;  %v491_v14 = vpack.c.bf16 %v76_v11, %v74_v10  ;;  %v78_v16 = vld [vmem:[#allocation6 + $0x40] sm:$0xff]  ;;  %p641_p10 = scmp.ne.s32.totalorder %s434_s9, %s640_s10  ;;  %p646_p12 = scmp.lt.s32.totalorder %s640_s10, %s640_s10 }
  0x3b   :  { %488 = vmatpush1.bf16.msra.mxu0 %v487_v8  ;;  %v493_v15 = vpack.c.bf16 %v81_v13, %v79_v12  ;;  %v80_v17 = vld [vmem:[#allocation6 + $0x50] sm:$0xff]  ;;  %v83_v18 = vld [vmem:[#allocation6 + $0x68] sm:$0xff]  ;;  %v85_v19 = vld [vmem:[#allocation6 + $0x78] sm:$0xff] }
  0x3c   :  { %490 = vmatprep.subr.bf16.mxu0 %v489_v9  ;;  %v495_v20 = vpack.c.bf16 %v80_v17, %v78_v16  ;;  %v497_v21 = vpack.c.bf16 %v85_v19, %v83_v18  ;;  %v82_v22 = vld [vmem:[#allocation6 + $0x60] sm:$0xff]  ;;  %v84_v23 = vld [vmem:[#allocation6 + $0x70] sm:$0xff]  ;;  %v87_v24 = vld [vmem:[#allocation6 + $0x88] sm:$0xff]  ;;  %p647_p13 = por %p646_p12, %p645_p11 }
  0x3d   :  { %v89_v25 = vld [vmem:[#allocation6 + $0x98] sm:$0xff]  ;;  %v499_v26 = vpack.c.bf16 %v84_v23, %v82_v22  ;;  %v86_v28 = vld [vmem:[#allocation6 + $0x80] sm:$0xff]  ;;  %v88_v29 = vld [vmem:[#allocation6 + $0x90] sm:$0xff] }
  0x3e   :  { %v501_v27 = vpack.c.bf16 %v89_v25, %v87_v24  ;;  %v91_v30 = vld [vmem:[#allocation6 + $0xa8] sm:$0xff]  ;;  %v93_v31 = vld [vmem:[#allocation6 + $0xb8] sm:$0xff]  ;;  %v503_v32 = vpack.c.bf16 %v88_v29, %v86_v28  ;;  %v90_v34 = vld [vmem:[#allocation6 + $0xa0] sm:$0xff]  ;;  %p648_p0 = pnand %p647_p13, %p641_p10 }
  0x3f   :  { %492 = vmatpush1.bf16.msra.mxu0 %v491_v14  ;;  %v505_v33 = vpack.c.bf16 %v93_v31, %v91_v30  ;;  %v92_v35 = vld [vmem:[#allocation6 + $0xb0] sm:$0xff]  ;;  %v95_v36 = vld [vmem:[#allocation6 + $0xc8] sm:$0xff]  ;;  %v97_v37 = vld [vmem:[#allocation6 + $0xd8] sm:$0xff] }
  0x40   :  { %494 = vmatprep.subr.bf16.mxu0 %v493_v15  ;;  %v507_v38 = vpack.c.bf16 %v92_v35, %v90_v34  ;;  %v509_v39 = vpack.c.bf16 %v97_v37, %v95_v36  ;;  %v94_v40 = vld [vmem:[#allocation6 + $0xc0] sm:$0xff]  ;;  %v96_v41 = vld [vmem:[#allocation6 + $0xd0] sm:$0xff]  ;;  %v99_v42 = vld [vmem:[#allocation6 + $0xe8] sm:$0xff]  ;;  %v104_v35 = vlaneseq }
  0x41   :  { %v101_v43 = vld [vmem:[#allocation6 + $0xf8] sm:$0xff]  ;;  %v511_v44 = vpack.c.bf16 %v96_v41, %v94_v40  ;;  %v98_v46 = vld [vmem:[#allocation6 + $0xe0] sm:$0xff]  ;;  %v100_v47 = vld [vmem:[#allocation6 + $0xf0] sm:$0xff] }
  0x42   :  { %v513_v45 = vpack.c.bf16 %v101_v43, %v99_v42  ;;  %v515_v48 = vpack.c.bf16 %v100_v47, %v98_v46  ;;  %v68_v49 = vld [vmem:[#allocation3] sm:$0xff]  ;;  %v69_v50 = vld [vmem:[#allocation3 + $0x8] sm:$0xff]  ;;  %v317_v51 = vld [vmem:[#allocation8 + $0x80] sm:$0xff]  ;;  %v105_v36 = vshrl.u32 %v104_v35, 7 }
  0x43   :  { %496 = vmatpush1.bf16.msra.mxu0 %v495_v20  ;;  %v318_v52 = vld [vmem:[#allocation8 + $0x88] sm:$0xff]  ;;  %v301_v53 = vld [vmem:[#allocation8] sm:$0xff]  ;;  %v319_v56 = vld [vmem:[#allocation8 + $0x90] sm:$0xff] }
  0x44   :  { %498 = vmatprep.subr.bf16.mxu0 %v497_v21  ;;  %v517_v54 = vpack.c.bf16 %v318_v52, %v317_v51  ;;  %v302_v55 = vld [vmem:[#allocation8 + $0x8] sm:$0xff]  ;;  %v320_v57 = vld [vmem:[#allocation8 + $0x98] sm:$0xff]  ;;  %v303_v60 = vld [vmem:[#allocation8 + $0x10] sm:$0xff]  ;;  %v106_v37 = vsub.s32 0, %v105_v36 }
  0x45   :  { %v519_v58 = vpack.c.bf16 %v302_v55, %v301_v53  ;;  %v521_v59 = vpack.c.bf16 %v320_v57, %v319_v56  ;;  %v304_v61 = vld [vmem:[#allocation8 + $0x18] sm:$0xff]  ;;  %v321_v62 = vld [vmem:[#allocation8 + $0xa0] sm:$0xff]  ;;  %v322_v63 = vld [vmem:[#allocation8 + $0xa8] sm:$0xff] }
  0x46   :  { %518 = vmatprep.subr.bf16.mxu1 %v517_v54  ;;  %v523_v1 = vpack.c.bf16 %v304_v61, %v303_v60  ;;  %v305_v2 = vld [vmem:[#allocation8 + $0x20] sm:$0xff]  ;;  %v306_v3 = vld [vmem:[#allocation8 + $0x28] sm:$0xff]  ;;  %v323_v4 = vld [vmem:[#allocation8 + $0xb0] sm:$0xff] }
  0x47   :  { %500 = vmatpush1.bf16.msra.mxu0 %v499_v26  ;;  %520 = vmatpush3.bf16.msra.mxu1 %v519_v58  ;;  %v324_v5 = vld [vmem:[#allocation8 + $0xb8] sm:$0xff]  ;;  %v527_v6 = vpack.c.bf16 %v306_v3, %v305_v2  ;;  %v307_v8 = vld [vmem:[#allocation8 + $0x30] sm:$0xff]  ;;  %v325_v10 = vld [vmem:[#allocation8 + $0xc0] sm:$0xff] }
  0x48   :  { %502 = vmatprep.subr.bf16.mxu0 %v501_v27  ;;  %522 = vmatprep.subr.bf16.mxu1 %v521_v59  ;;  %v529_v7 = vpack.c.bf16 %v324_v5, %v323_v4  ;;  %v308_v9 = vld [vmem:[#allocation8 + $0x38] sm:$0xff]  ;;  %v326_v11 = vld [vmem:[#allocation8 + $0xc8] sm:$0xff]  ;;  %v309_v14 = vld [vmem:[#allocation8 + $0x40] sm:$0xff] }
  0x49   :  { %v531_v12 = vpack.c.bf16 %v308_v9, %v307_v8  ;;  %v533_v13 = vpack.c.bf16 %v326_v11, %v325_v10  ;;  %v310_v15 = vld [vmem:[#allocation8 + $0x48] sm:$0xff]  ;;  %v327_v16 = vld [vmem:[#allocation8 + $0xd0] sm:$0xff]  ;;  %v328_v17 = vld [vmem:[#allocation8 + $0xd8] sm:$0xff] }
  0x4a   :  { %v535_v18 = vpack.c.bf16 %v310_v15, %v309_v14  ;;  %v537_v19 = vpack.c.bf16 %v328_v17, %v327_v16  ;;  %v311_v20 = vld [vmem:[#allocation8 + $0x50] sm:$0xff]  ;;  %v312_v21 = vld [vmem:[#allocation8 + $0x58] sm:$0xff]  ;;  %v329_v22 = vld [vmem:[#allocation8 + $0xe0] sm:$0xff] }
  0x4b   :  { %504 = vmatpush1.bf16.msra.mxu0 %v503_v32  ;;  %524 = vmatpush3.bf16.msra.mxu1 %v523_v1  ;;  %v330_v23 = vld [vmem:[#allocation8 + $0xe8] sm:$0xff]  ;;  %v539_v24 = vpack.c.bf16 %v312_v21, %v311_v20  ;;  %v313_v26 = vld [vmem:[#allocation8 + $0x60] sm:$0xff]  ;;  %v331_v28 = vld [vmem:[#allocation8 + $0xf0] sm:$0xff] }
  0x4c   :  { %506 = vmatprep.subr.bf16.mxu0 %v505_v33  ;;  %v541_v25 = vpack.c.bf16 %v330_v23, %v329_v22  ;;  %v314_v27 = vld [vmem:[#allocation8 + $0x68] sm:$0xff]  ;;  %v332_v29 = vld [vmem:[#allocation8 + $0xf8] sm:$0xff]  ;;  %v315_v32 = vld [vmem:[#allocation8 + $0x70] sm:$0xff] }
  0x4d   :  { %v543_v30 = vpack.c.bf16 %v314_v27, %v313_v26  ;;  %v545_v31 = vpack.c.bf16 %v332_v29, %v331_v28  ;;  %v316_v33 = vld [vmem:[#allocation8 + $0x78] sm:$0xff] }
  0x4e   :  { %v547_v34 = vpack.c.bf16 %v316_v33, %v315_v32 }
  0x4f   :  { %508 = vmatpush1.bf16.msra.mxu0 %v507_v38  ;;  %v102_v38 = vld [vmem:[%s806_s2] sm:$0x3] }
  0x50   :  { %510 = vmatprep.subr.bf16.mxu0 %v509_v39  ;;  %v110_v39 = vsub.s32 1, %v105_v36  ;;  %v107_v40 = vrot.slane %v102_v38, %v106_v37 }
  0x52   :  { %v111_v41 = vrot.slane %v102_v38, %v110_v39 }
  0x53   :  { %512 = vmatpush1.bf16.msra.mxu0 %v511_v44 }
  0x54   :  { %514 = vmatprep.subr.bf16.mxu0 %v513_v45 }
  0x57   :  { %516 = vmatpush1.bf16.msra.mxu0 %v515_v48 }
  0x5a   :  { %179 = vmatmul.mubr.f32.vlgmr.msra.gmra.mrb[0].mxu0 %v68_v49 }
  0x5b   :  { %184 = vmatprep.mubr.f32.mxu0 %v675_v0  ;;  %v525_v0 = vpack.c.bf16 %v322_v63, %v321_v62 }
  0x5d   :  { %526 = vmatprep.subr.bf16.mxu1 %v525_v0 }
  0x5e   :  { %185 = vmatmul.mubr.f32.gmra.mrb[2].mxu0 %v69_v50  ;;  %528 = vmatpush3.bf16.msra.mxu1 %v527_v6 }
  0x5f   :  { %530 = vmatprep.subr.bf16.mxu1 %v529_v7 }
  0x62   :  { %532 = vmatpush3.bf16.msra.mxu1 %v531_v12 }
  0x63   :  { %534 = vmatprep.subr.bf16.mxu1 %v533_v13 }
  0x66   :  { %536 = vmatpush3.bf16.msra.mxu1 %v535_v18 }
  0x67   :  { %538 = vmatprep.subr.bf16.mxu1 %v537_v19 }
  0x6a   :  { %540 = vmatpush3.bf16.msra.mxu1 %v539_v24 }
  0x6b   :  { %542 = vmatprep.subr.bf16.mxu1 %v541_v25 }
  0x6e   :  { %544 = vmatpush3.bf16.msra.mxu1 %v543_v30 }
  0x6f   :  { %546 = vmatprep.subr.bf16.mxu1 %v545_v31 }
  0x72   :  { %548 = vmatpush3.bf16.msra.mxu1 %v547_v34 }
 0x12d   :  { %v180_v42 = vpop.f32.mrb[0].mxu0 }
 0x12e   :  { %v754_v43 = vadd.f32 %v180_v42, %v107_v40  ;;  %v182_v44 = vpop.f32.mrb[1].mxu0 }
 0x12f   :  { %v756_v45 = vadd.f32 %v182_v44, %v111_v41 }
 0x130   :  { %v759_v46 = vmul.f32 0.70710677, %v754_v43 }
 0x131   :  { %v762_v47 = vmul.f32 0.70710677, %v756_v45  ;;  %v186_v48 = vpop.f32.mrb[2].mxu0 }
 0x132   :  { %v199_v49 = vand.u32 2147483647, %v759_v46  ;;  %v765_v50 = vadd.f32 %v186_v48, %v107_v40  ;;  %v188_v51 = vpop.f32.mrb[3].mxu0  ;;  %vm279_vm0 = vcmp.ge.f32.partialorder %v759_v46, 0.0 }
 0x133   :  { %v200_v52 = vand.u32 2147483647, %v762_v47  ;;  %v768_v53 = vadd.f32 %v188_v51, %v111_v41  ;;  %vm280_vm1 = vcmp.ge.f32.partialorder %v762_v47, 0.0 }
 0x134   :  { %v203_v54 = vmul.f32 0.3275911, %v199_v49  ;;  %v771_v55 = vmul.f32 0.70710677, %v765_v50  ;;  %v255_v2 = vsub.f32 0.0, %v199_v49 }
 0x135   :  { %v204_v56 = vmul.f32 0.3275911, %v200_v52  ;;  %v774_v57 = vmul.f32 0.70710677, %v768_v53  ;;  %v256_v3 = vsub.f32 0.0, %v200_v52 }
 0x136   :  { %v207_v58 = vadd.f32 1.0, %v203_v54  ;;  %v201_v59 = vand.u32 2147483647, %v771_v55  ;;  %v259_v5 = vmul.f32 %v255_v2, %v199_v49  ;;  %vm281_vm2 = vcmp.ge.f32.partialorder %v771_v55, 0.0 }
 0x137   :  { %v208_v60 = vadd.f32 1.0, %v204_v56  ;;  %v202_v61 = vand.u32 2147483647, %v774_v57  ;;  %v260_v8 = vmul.f32 %v256_v3, %v200_v52  ;;  %vm282_vm3 = vcmp.ge.f32.partialorder %v774_v57, 0.0  ;;  %v446_v57 = vld [vmem:[%s808_s4] ss:$0 sm:$0xff] }
 0x138   :  { %558 = vrcp.f32 %v207_v58  ;;  %v205_v62 = vmul.f32 0.3275911, %v201_v59  ;;  %v257_v6 = vsub.f32 0.0, %v201_v59  ;;  %v263_v14 = vmul.f32 1.442695, %v259_v5 }
 0x139   :  { %560 = vrcp.f32 %v208_v60  ;;  %v206_v63 = vmul.f32 0.3275911, %v202_v61  ;;  %v258_v9 = vsub.f32 0.0, %v202_v61  ;;  %v265_v18 = vmul.f32 1.442695, %v260_v8 }
 0x13a   :  { %v209_v1 = vadd.f32 1.0, %v205_v62  ;;  %v261_v15 = vmul.f32 %v257_v6, %v201_v59 }
 0x13b   :  { %v210_v0 = vadd.f32 1.0, %v206_v63  ;;  %v262_v19 = vmul.f32 %v258_v9, %v202_v61 }
 0x13c   :  { %562 = vrcp.f32 %v209_v1  ;;  %v267_v26 = vmul.f32 1.442695, %v261_v15 }
 0x13d   :  { %564 = vrcp.f32 %v210_v0  ;;  %v269_v29 = vmul.f32 1.442695, %v262_v19 }
 0x13e   :  { %566 = vpow2.f32 %v263_v14 }
 0x13f   :  { %568 = vpow2.f32 %v265_v18 }
 0x140   :  { %570 = vpow2.f32 %v267_v26 }
 0x141   :  { %572 = vpow2.f32 %v269_v29 }
 0x142   :  { %v559_v4 = vpop.eup %558 }
 0x143   :  { %v561_v7 = vpop.eup %560  ;;  %v219_v10 = vmul.f32 1.0614054, %v559_v4 }
 0x144   :  { %v220_v11 = vmul.f32 1.0614054, %v561_v7 }
 0x145   :  { %v223_v12 = vadd.f32 -1.4531521, %v219_v10 }
 0x146   :  { %v563_v13 = vpop.eup %562  ;;  %v224_v16 = vadd.f32 -1.4531521, %v220_v11 }
 0x147   :  { %v565_v17 = vpop.eup %564  ;;  %v227_v20 = vmul.f32 %v559_v4, %v223_v12  ;;  %v221_v21 = vmul.f32 1.0614054, %v563_v13 }
 0x148   :  { %v228_v22 = vmul.f32 %v561_v7, %v224_v16  ;;  %v222_v23 = vmul.f32 1.0614054, %v565_v17  ;;  %v567_v54 = vpop.eup %566  ;;  %v192_v16 = vmul.f32 0.5, %v756_v45  ;;  %v193_v45 = vmul.f32 0.5, %v765_v50 }
 0x149   :  { %v231_v24 = vadd.f32 1.4214138, %v227_v20  ;;  %v225_v25 = vadd.f32 -1.4531521, %v221_v21  ;;  %v569_v59 = vpop.eup %568 }
 0x14a   :  { %v232_v27 = vadd.f32 1.4214138, %v228_v22  ;;  %v226_v28 = vadd.f32 -1.4531521, %v222_v23  ;;  %v571_v2 = vpop.eup %570  ;;  %v194_v23 = vmul.f32 0.5, %v768_v53 }
 0x14b   :  { %v235_v30 = vmul.f32 %v559_v4, %v231_v24  ;;  %v229_v31 = vmul.f32 %v563_v13, %v225_v25  ;;  %v573_v6 = vpop.eup %572 }
 0x14c   :  { %v236_v32 = vmul.f32 %v561_v7, %v232_v27  ;;  %v230_v33 = vmul.f32 %v565_v17, %v226_v28 }
 0x14d   :  { %v239_v34 = vadd.f32 -0.28449672, %v235_v30  ;;  %v233_v35 = vadd.f32 1.4214138, %v229_v31 }
 0x14e   :  { %v240_v36 = vadd.f32 -0.28449672, %v236_v32  ;;  %v234_v37 = vadd.f32 1.4214138, %v230_v33 }
 0x14f   :  { %v243_v38 = vmul.f32 %v559_v4, %v239_v34  ;;  %v237_v39 = vmul.f32 %v563_v13, %v233_v35 }
 0x150   :  { %v244_v40 = vmul.f32 %v561_v7, %v240_v36  ;;  %v238_v41 = vmul.f32 %v565_v17, %v234_v37 }
 0x151   :  { %v247_v42 = vadd.f32 0.2548296, %v243_v38  ;;  %v241_v44 = vadd.f32 -0.28449672, %v237_v39 }
 0x152   :  { %v248_v48 = vadd.f32 0.2548296, %v244_v40  ;;  %v242_v49 = vadd.f32 -0.28449672, %v238_v41 }
 0x153   :  { %v251_v51 = vmul.f32 %v559_v4, %v247_v42  ;;  %v245_v52 = vmul.f32 %v563_v13, %v241_v44 }
 0x154   :  { %v252_v56 = vmul.f32 %v561_v7, %v248_v48  ;;  %v246_v58 = vmul.f32 %v565_v17, %v242_v49 }
 0x155   :  { %v271_v60 = vmul.f32 %v567_v54, %v251_v51  ;;  %v249_v61 = vadd.f32 0.2548296, %v245_v52 }
 0x156   :  { %v272_v62 = vmul.f32 %v569_v59, %v252_v56  ;;  %v250_v63 = vadd.f32 0.2548296, %v246_v58 }
 0x157   :  { %v275_v1 = vsub.f32 1.0, %v271_v60  ;;  %v253_v0 = vmul.f32 %v563_v13, %v249_v61 }
 0x158   :  { %v276_v3 = vsub.f32 1.0, %v272_v62  ;;  %v254_v5 = vmul.f32 %v565_v17, %v250_v63  ;;  %v191_v17 = vmul.f32 0.5, %v754_v43 }
 0x159   :  { %v283_v8 = vsub.f32 0.0, %v275_v1  ;;  %v273_v9 = vmul.f32 %v571_v2, %v253_v0 }
 0x15a   :  { %v284_v4 = vsub.f32 0.0, %v276_v3  ;;  %v274_v10 = vmul.f32 %v573_v6, %v254_v5 }
 0x15b   :  { %v287_v7 = vsel %vm279_vm0, %v275_v1, %v283_v8  ;;  %v277_v11 = vsub.f32 1.0, %v273_v9 }
 0x15c   :  { %v288_v12 = vsel %vm280_vm1, %v276_v3, %v284_v4  ;;  %v291_v14 = vadd.f32 1.0, %v287_v7  ;;  %v278_v15 = vsub.f32 1.0, %v274_v10 }
 0x15d   :  { %v292_v13 = vadd.f32 1.0, %v288_v12  ;;  %v285_v18 = vsub.f32 0.0, %v277_v11 }
 0x15e   :  { %v286_v19 = vsub.f32 0.0, %v278_v15  ;;  %v295_v21 = vmul.f32 %v291_v14, %v191_v17 }
 0x15f   :  { %v296_v46 = vmul.f32 %v292_v13, %v192_v16  ;;  %v289_v20 = vsel %vm281_vm2, %v277_v11, %v285_v18 }
 0x160   :  { %v290_v47 = vsel %vm282_vm3, %v278_v15, %v286_v19  ;;  %v293_v22 = vadd.f32 1.0, %v289_v20 }
 0x161   :  { %397 = vmatprep.mubr.f32.mxu1 %v296_v46  ;;  %v294_v24 = vadd.f32 1.0, %v290_v47 }
 0x162   :  { %398 = vmatmul.mubr.f32.vlgmr.msra.gmra.mrb[0].mxu1 %v295_v21  ;;  %v297_v26 = vmul.f32 %v293_v22, %v193_v45 }
 0x163   :  { %v298_v25 = vmul.f32 %v294_v24, %v194_v23 }
 0x165   :  { %402 = vmatprep.mubr.f32.mxu1 %v298_v25 }
 0x166   :  { %403 = vmatmul.mubr.f32.gmra.mrb[2].mxu1 %v297_v26 }
 0x235   :  { %v479_v43 = vpop.f32.mrb[0].mxu1 }
 0x236   :  { %v480_v55 = vpop.f32.mrb[1].mxu1 }
 0x237   :  { %v481_v27 = vadd.f32 %v480_v55, %v479_v43 }
 0x239   :  { %v424_v28 = vadd.f32 %v481_v27, %v446_v57  ;;  %v482_v29 = vpop.f32.mrb[2].mxu1 }
 0x23a   :  { %v483_v30 = vpop.f32.mrb[3].mxu1 }
 0x23b   :  { %426 = vst [vmem:[#allocation9] sm:$0xff] %v424_v28  ;;  %v484_v53 = vadd.f32 %v483_v30, %v482_v29 }
 0x23d   :  { %v425_v50 = vadd.f32 %v484_v53, %v446_v57 }
 0x23f   :  { %427 = vst [vmem:[#allocation9 + $0x8] sm:$0xff] %v425_v50 }
 0x240   :  { %651 = shalt.err (!%p648_p0)
}
 0x241   :  { %s652_s12 = scalar_lea.hbm %s809_s5, 256 }
 0x242   :  { %p653_p1 = scmp.ne.s32.totalorder %s809_s5, %s652_s12  ;;  %p656_p2 = scmp.lt.u32.totalorder %s652_s12, %s809_s5 }
 0x244   :  { %p658_p3 = pnand %p656_p2, %p653_p1 }
 0x246   :  { %661 = shalt.err (!%p658_p3)
}
 0x247   :  { %439 = dma.vmem_to_hbm [thread:$0]  %s434_s9, 256, %s809_s5, [#allocation5], %s672_s1, %s672_s1, %s673_s17  }
 0x248   :  { %666 = dma.done.wait [#allocation5], 256  }
 0x249   :  { %667 = vsyncadd [#allocation5], 4294967040 }
 0x24a   :  { %443 = vsyncpa [#allocation4], 1 }
 0x24b   :  { %444 = vsyncpa [#allocation7], 1 }
 0x24c   :  { %445 = vsyncpa [#allocation5], 1 }

</bundles_post_ra>
